<compile_context>
chip_gen: v7x
topology: tpu7x:2x2x1
jax: 0.10.0
libtpu: 0.0.40
codegen_flags: <defaults>
</compile_context>

<pallas_src>
import functools

import jax
import jax.numpy as jnp
from jax import lax
from jax.experimental import pallas as pl
from jax.experimental.pallas import tpu as pltpu


def _pick_tile(dim, preferred):
    """Largest power-of-two tile <= preferred that divides dim (fallback: dim)."""
    for cand in (1024, 512, 256, 128, 64, 32, 16, 8):
        if cand <= preferred and dim % cand == 0:
            return cand
    return dim


# -----------------------------------------------------------------------------
# tiled linear kernel with in-kernel column split:
#   acc = x @ w_t + b ;  outputs = equal column splits of acc
# -----------------------------------------------------------------------------
def _split_linear_kernel(x_ref, wt_ref, b_ref, *o_refs):
    acc = jnp.dot(x_ref[...], wt_ref[...], preferred_element_type=jnp.float32)
    acc = acc + b_ref[...]
    piece = acc.shape[-1] // len(o_refs)
    for i, o_ref in enumerate(o_refs):
        o_ref[...] = acc[:, i * piece:(i + 1) * piece].astype(o_ref.dtype)


def _split_linear(x, w_t, b, n_split, *, out_dtype, tile_m=256):
    """x: (M, K) bf16, w_t: (K, N) bf16, b: (N,) f32 -> n_split arrays (M, N/n_split)."""
    M, K = x.shape
    N = w_t.shape[1]
    assert N % n_split == 0
    piece = N // n_split
    tm = _pick_tile(M, tile_m)
    b2 = b.reshape(1, N).astype(jnp.float32)
    outs = pl.pallas_call(
        _split_linear_kernel,
        grid=(M // tm,),
        in_specs=[
            pl.BlockSpec((tm, K), lambda i: (i, 0)),
            pl.BlockSpec((K, N), lambda i: (0, 0)),   # weight stays VMEM-resident
            pl.BlockSpec((1, N), lambda i: (0, 0)),   # bias stays VMEM-resident
        ],
        out_specs=tuple(pl.BlockSpec((tm, piece), lambda i: (i, 0))
                        for _ in range(n_split)),
        out_shape=tuple(jax.ShapeDtypeStruct((M, piece), out_dtype)
                        for _ in range(n_split)),
        compiler_params=pltpu.CompilerParams(
            dimension_semantics=("parallel",),
            vmem_limit_bytes=48 * 1024 * 1024),
    )(x, w_t, b2)
    if not isinstance(outs, (list, tuple)):
        outs = (outs,)
    return tuple(outs)


# -----------------------------------------------------------------------------
# flash-style attention core (heads unrolled in-kernel) with head-averaged
# probability output.  grid = (B, T-tiles, S-tiles); q/k/v are (B, L, E) bf16.
# -----------------------------------------------------------------------------
def _flash_mha_kernel(q_ref, k_ref, v_ref, ctx_ref, aw_ref,
                      m_sc, l_sc, acc_sc, p_hist, m_hist,
                      *, num_heads, head_dim, block_k, num_k_blocks):
    si = pl.program_id(2)
    H, D = num_heads, head_dim

    @pl.when(si == 0)
    def _():
        m_sc[...] = jnp.full(m_sc.shape, -jnp.inf, dtype=m_sc.dtype)
        l_sc[...] = jnp.zeros(l_sc.shape, dtype=l_sc.dtype)
        acc_sc[...] = jnp.zeros(acc_sc.shape, dtype=acc_sc.dtype)

    # per-head online softmax update for this S tile (static unroll, static slices)
    for h in range(H):
        q_h = q_ref[:, h * D:(h + 1) * D]     # (tq, D) bf16
        k_h = k_ref[:, h * D:(h + 1) * D]     # (tk, D) bf16
        v_h = v_ref[:, h * D:(h + 1) * D]     # (tk, D) bf16
        # (tq, tk) scores; 1/sqrt(D) is pre-folded into the Q projection weights
        s = lax.dot_general(q_h, k_h, (((1,), (1,)), ((), ())),
                            preferred_element_type=jnp.float32)
        m_prev = m_sc[h]
        m_new = jnp.maximum(m_prev, jnp.max(s, axis=-1, keepdims=True))
        alpha = jnp.exp(m_prev - m_new)
        p = jnp.exp(s - m_new)                # the only exp over (tq, tk)
        l_sc[h] = alpha * l_sc[h] + jnp.sum(p, axis=-1, keepdims=True)
        acc_sc[h] = alpha * acc_sc[h] + jnp.dot(
            p.astype(v_h.dtype), v_h, preferred_element_type=jnp.float32)
        m_sc[h] = m_new
        # stash unnormalized tile probabilities + the max they were taken at;
        # the finalize step rescales instead of recomputing exp over (tq, S).
        p_hist[h, si] = p
        m_hist[h, si] = m_new

    @pl.when(si == num_k_blocks - 1)
    def _():
        inv_h = 1.0 / num_heads
        inv_l_exact = [1.0 / l_sc[h] for h in range(H)]      # exact for aw path
        # lane-dense context: one (tq, E) block written per (b, t)
        for h in range(H):
            inv_l = pl.reciprocal(l_sc[h], approx=True)      # EUP slot, ~free
            ctx_ref[:, h * D:(h + 1) * D] = (acc_sc[h] * inv_l).astype(ctx_ref.dtype)
        # head-averaged probabilities via rescale of stored tiles (no 2nd exp pass)
        for sb in range(num_k_blocks):
            tile = None
            for h in range(H):
                scale = jnp.exp(m_hist[h, sb] - m_sc[h]) * inv_l_exact[h]
                contrib = p_hist[h, sb] * scale
                tile = contrib if tile is None else tile + contrib
            aw_ref[:, sb * block_k:(sb + 1) * block_k] = tile * inv_h


def _flash_attention(q, k, v, *, num_heads, block_q=256, block_k=512):
    """q: (B,T,E), k/v: (B,S,E) bf16 -> ctx (B,T,E) bf16, aw (B,T,S) f32."""
    B, T, E = q.shape
    S = k.shape[1]
    H = num_heads
    D = E // H
    tq = _pick_tile(T, block_q)
    tk = _pick_tile(S, block_k)
    n_s = S // tk
    grid = (B, T // tq, n_s)

    kernel = functools.partial(_flash_mha_kernel, num_heads=H, head_dim=D,
                               block_k=tk, num_k_blocks=n_s)
    flops = 4 * B * H * T * S * D                        # QK^T + PV
    bytes_accessed = int((q.size + k.size + v.size) * 2   # bf16 in
                         + B * T * E * 2 + B * T * S * 4)  # bf16 ctx + f32 aw out

    return pl.pallas_call(
        kernel,
        grid=grid,
        in_specs=[
            pl.BlockSpec((None, tq, E), lambda b, t, s: (b, t, 0)),
            pl.BlockSpec((None, tk, E), lambda b, t, s: (b, s, 0)),
            pl.BlockSpec((None, tk, E), lambda b, t, s: (b, s, 0)),
        ],
        out_specs=(
            # both outputs are resident across the S (arbitrary) axis
            pl.BlockSpec((None, tq, E), lambda b, t, s: (b, t, 0)),
            pl.BlockSpec((None, tq, S), lambda b, t, s: (b, t, 0)),
        ),
        out_shape=(jax.ShapeDtypeStruct((B, T, E), jnp.bfloat16),
                   jax.ShapeDtypeStruct((B, T, S), jnp.float32)),
        scratch_shapes=[
            pltpu.VMEM((H, tq, 1), jnp.float32),         # running max per head
            pltpu.VMEM((H, tq, 1), jnp.float32),         # running sum per head
            pltpu.VMEM((H, tq, D), jnp.float32),         # context accumulators
            pltpu.VMEM((H, n_s, tq, tk), jnp.float32),   # unnormalized tile probs
            pltpu.VMEM((H, n_s, tq, 1), jnp.float32),    # per-tile running max
        ],
        compiler_params=pltpu.CompilerParams(
            dimension_semantics=("parallel", "parallel", "arbitrary"),
            vmem_limit_bytes=48 * 1024 * 1024),
        cost_estimate=pl.CostEstimate(
            flops=int(flops),
            transcendentals=int(B * H * T * S),
            bytes_accessed=bytes_accessed),
    )(q, k, v)


# -----------------------------------------------------------------------------
# full module forward
# -----------------------------------------------------------------------------
def multihead_attention(query, key, value, params, num_heads, attn_mask=None,
                        *, block_q=256, block_k=512):
    """query: (T,B,E), key/value: (S,B,E) f32 -> (attn (T,B,E), attn_weights (B,T,S))."""
    assert attn_mask is None  # TODO(synk): attn_mask / key_padding_mask unsupported
    T, B, E = query.shape
    S = key.shape[0]
    H = num_heads
    D = E // H
    assert D * H == E, "embed_dim must be divisible by num_heads"
    scaling = float(D) ** -0.5

    w_in = params['in_proj_weight']       # (3E, E)
    b_in = params['in_proj_bias']         # (3E,)
    w_out = params['out_proj_weight']     # (E, E)
    b_out = params['out_proj_bias']       # (E,)

    # constant weight transforms: transpose for x @ Wt, fold 1/sqrt(D) into the
    # Q rows, cast to bf16 so both projection GEMMs take the fast MXU path.
    qscale = jnp.concatenate([jnp.full((E,), scaling, jnp.float32),
                              jnp.ones((2 * E,), jnp.float32)])
    w_in_t = (w_in.T * qscale[None, :]).astype(jnp.bfloat16)   # (E, 3E)
    b_in_s = b_in * qscale                                     # bias stays f32
    w_out_t = w_out.T.astype(jnp.bfloat16)

    # single batch-major relayout of the activations (replaces the three
    # head-major q/k/v transposes + the ctx transpose of the previous version)
    xq = jnp.transpose(query, (1, 0, 2)).astype(jnp.bfloat16).reshape(B * T, E)

    if (query is key) and (key is value):
        # self-attention: one fused QKV GEMM, split into 3 outputs in-kernel
        q2d, k2d, v2d = _split_linear(xq, w_in_t, b_in_s, 3, out_dtype=jnp.bfloat16)
    elif key is value:
        xkv = jnp.transpose(key, (1, 0, 2)).astype(jnp.bfloat16).reshape(B * S, E)
        (q2d,) = _split_linear(xq, w_in_t[:, :E], b_in_s[:E], 1,
                               out_dtype=jnp.bfloat16)
        k2d, v2d = _split_linear(xkv, w_in_t[:, E:], b_in_s[E:], 2,
                                 out_dtype=jnp.bfloat16)
    else:
        xk = jnp.transpose(key, (1, 0, 2)).astype(jnp.bfloat16).reshape(B * S, E)
        xv = jnp.transpose(value, (1, 0, 2)).astype(jnp.bfloat16).reshape(B * S, E)
        (q2d,) = _split_linear(xq, w_in_t[:, :E], b_in_s[:E], 1,
                               out_dtype=jnp.bfloat16)
        (k2d,) = _split_linear(xk, w_in_t[:, E:2 * E], b_in_s[E:2 * E], 1,
                               out_dtype=jnp.bfloat16)
        (v2d,) = _split_linear(xv, w_in_t[:, 2 * E:], b_in_s[2 * E:], 1,
                               out_dtype=jnp.bfloat16)

    # free reshapes: rows are already batch-major
    q3 = q2d.reshape(B, T, E)
    k3 = k2d.reshape(B, S, E)
    v3 = v2d.reshape(B, S, E)

    ctx, attn_weights = _flash_attention(q3, k3, v3, num_heads=H,
                                         block_q=block_q, block_k=block_k)

    # output projection on the lane-dense bf16 context, then back to (T, B, E)
    (attn2d,) = _split_linear(ctx.reshape(B * T, E), w_out_t, b_out, 1,
                              out_dtype=jnp.float32)
    attn = jnp.transpose(attn2d.reshape(B, T, E), (1, 0, 2))
    return attn, attn_weights


# -----------------------------------------------------------------------------
# parameter init + pure-JAX reference (mirrors the PyTorch forward, dropout=0)
# -----------------------------------------------------------------------------
def init_params(key, embed_dim):
    k1, k2, k3, k4 = jax.random.split(key, 4)

    def xavier_uniform(k, shape):
        fan_out, fan_in = shape
        a = (6.0 / (fan_in + fan_out)) ** 0.5
        return jax.random.uniform(k, shape, jnp.float32, minval=-a, maxval=a)

    return {
        'in_proj_weight': xavier_uniform(k1, (3 * embed_dim, embed_dim)),
        # reset_parameters() zeroes the biases; small random biases here so the
        # bias-add path is actually exercised by the correctness check.
        'in_proj_bias': 0.02 * jax.random.normal(k3, (3 * embed_dim,), jnp.float32),
        'out_proj_weight': xavier_uniform(k2, (embed_dim, embed_dim)),
        'out_proj_bias': 0.02 * jax.random.normal(k4, (embed_dim,), jnp.float32),
    }


def reference_mha(query, key, value, params, num_heads):
    T, B, E = query.shape
    S = key.shape[0]
    D = E // num_heads
    scaling = float(D) ** -0.5
    w_in, b_in = params['in_proj_weight'], params['in_proj_bias']
    q = query @ w_in[:E].T + b_in[:E]
    k = key @ w_in[E:2 * E].T + b_in[E:2 * E]
    v = value @ w_in[2 * E:].T + b_in[2 * E:]
    q = q * scaling
    q = q.reshape(T, B * num_heads, D).transpose(1, 0, 2)
    k = k.reshape(S, B * num_heads, D).transpose(1, 0, 2)
    v = v.reshape(S, B * num_heads, D).transpose(1, 0, 2)
    w = jnp.einsum('ntd,nsd->nts', q, k)
    w = jax.nn.softmax(w, axis=-1)
    attn = jnp.einsum('nts,nsd->ntd', w, v)
    attn = attn.transpose(1, 0, 2).reshape(T, B, E)
    attn = attn @ params['out_proj_weight'].T + params['out_proj_bias']
    aw = w.reshape(B, num_heads, T, S).sum(axis=1) / num_heads
    return attn, aw


if __name__ == "__main__":
    T, B, E, H = 256, 2, 128, 4          # D = 32
    S_CROSS = 128

    root = jax.random.PRNGKey(0)
    k_param, k_x, k_kv = jax.random.split(root, 3)
    params = init_params(k_param, E)

    # --- self-attention (fused QKV path; small blocks => multi-tile S loop) ---
    x = jax.random.normal(k_x, (T, B, E), jnp.float32)
    attn, aw = multihead_attention(x, x, x, params, H, block_q=128, block_k=128)
    attn = jax.block_until_ready(attn)
    aw = jax.block_until_ready(aw)
    ref_attn, ref_aw = reference_mha(x, x, x, params, H)
    assert attn.shape == (T, B, E) and aw.shape == (B, T, T)
    assert jnp.allclose(attn, ref_attn, atol=2e-2, rtol=2e-2), \
        float(jnp.max(jnp.abs(attn - ref_attn)))
    assert jnp.allclose(aw, ref_aw, atol=2e-3, rtol=1e-2), \
        float(jnp.max(jnp.abs(aw - ref_aw)))

    # --- cross-attention (fused KV path; default large blocks) ----------------
    kv = jax.random.normal(k_kv, (S_CROSS, B, E), jnp.float32)
    attn_c, aw_c = multihead_attention(x, kv, kv, params, H)
    attn_c = jax.block_until_ready(attn_c)
    aw_c = jax.block_until_ready(aw_c)
    ref_attn_c, ref_aw_c = reference_mha(x, kv, kv, params, H)
    assert attn_c.shape == (T, B, E) and aw_c.shape == (B, T, S_CROSS)
    assert jnp.allclose(attn_c, ref_attn_c, atol=2e-2, rtol=2e-2), \
        float(jnp.max(jnp.abs(attn_c - ref_attn_c)))
    assert jnp.allclose(aw_c, ref_aw_c, atol=2e-3, rtol=1e-2), \
        float(jnp.max(jnp.abs(aw_c - ref_aw_c)))

    print("KERNEL_OK")
</pallas_src>

<mosaic_0001>
module attributes {stable_mosaic.version = 11 : i64} {
  func.func @_split_linear_kernel(%arg0: i32, %arg1: memref<256x128xbf16, #tpu.memory_space<vmem>>, %arg2: memref<128x384xbf16, #tpu.memory_space<vmem>>, %arg3: memref<1x384xf32, #tpu.memory_space<vmem>>, %arg4: memref<256x128xbf16, #tpu.memory_space<vmem>>, %arg5: memref<256x128xbf16, #tpu.memory_space<vmem>>, %arg6: memref<256x128xbf16, #tpu.memory_space<vmem>>) attributes {dimension_semantics = [#tpu.dimension_semantics<parallel>], iteration_bounds = array<i64: 2>, scalar_prefetch = 0 : i64, scratch_operands = 0 : i64, tpu.core_type = #tpu.core_type<tc>, window_params = [{transform_indices = @transform_0, window_bounds = array<i64: 256, 128>}, {pipeline_mode = #tpu.pipeline_mode<synchronous>, transform_indices = @transform_1, window_bounds = array<i64: 128, 384>}, {pipeline_mode = #tpu.pipeline_mode<synchronous>, transform_indices = @transform_2, window_bounds = array<i64: 1, 384>}, {transform_indices = @transform_3, window_bounds = array<i64: 256, 128>}, {transform_indices = @transform_4, window_bounds = array<i64: 256, 128>}, {transform_indices = @transform_5, window_bounds = array<i64: 256, 128>}]} {
    %c0 = arith.constant 0 : index
    %c0_0 = arith.constant 0 : index
    %0 = vector.load %arg1[%c0, %c0_0] : memref<256x128xbf16, #tpu.memory_space<vmem>>, vector<256x128xbf16>
    %c0_1 = arith.constant 0 : index
    %c0_2 = arith.constant 0 : index
    %1 = vector.load %arg2[%c0_1, %c0_2] : memref<128x384xbf16, #tpu.memory_space<vmem>>, vector<128x384xbf16>
    %cst = arith.constant dense<0.000000e+00> : vector<256x384xf32>
    %2 = tpu.matmul %0, %1, %cst {dimension_numbers = #tpu.dot_dimension_numbers<[1], [0], [0], [1], [0, 0, 1, 1], [], []>} : vector<256x128xbf16>, vector<128x384xbf16>, vector<256x384xf32> -> vector<256x384xf32>
    %c0_3 = arith.constant 0 : index
    %c0_4 = arith.constant 0 : index
    %3 = vector.load %arg3[%c0_3, %c0_4] : memref<1x384xf32, #tpu.memory_space<vmem>>, vector<1x384xf32>
    %4 = vector.broadcast %3 : vector<1x384xf32> to vector<256x384xf32>
    %5 = arith.addf %2, %4 : vector<256x384xf32>
    %6 = vector.extract_strided_slice %5 {offsets = [0, 0], sizes = [256, 128], strides = [1, 1]} : vector<256x384xf32> to vector<256x128xf32>
    %7 = arith.truncf %6 : vector<256x128xf32> to vector<256x128xbf16>
    %c0_5 = arith.constant 0 : index
    %c0_6 = arith.constant 0 : index
    %8 = vector.load %arg4[%c0_5, %c0_6] : memref<256x128xbf16, #tpu.memory_space<vmem>>, vector<256x128xbf16>
    tpu.vector_store %arg4[%c0_5, %c0_6], %7 {strides = array<i32>} : memref<256x128xbf16, #tpu.memory_space<vmem>>, vector<256x128xbf16>,
    %9 = vector.extract_strided_slice %5 {offsets = [0, 128], sizes = [256, 128], strides = [1, 1]} : vector<256x384xf32> to vector<256x128xf32>
    %10 = arith.truncf %9 : vector<256x128xf32> to vector<256x128xbf16>
    %c0_7 = arith.constant 0 : index
    %c0_8 = arith.constant 0 : index
    %11 = vector.load %arg5[%c0_7, %c0_8] : memref<256x128xbf16, #tpu.memory_space<vmem>>, vector<256x128xbf16>
    tpu.vector_store %arg5[%c0_7, %c0_8], %10 {strides = array<i32>} : memref<256x128xbf16, #tpu.memory_space<vmem>>, vector<256x128xbf16>,
    %12 = vector.extract_strided_slice %5 {offsets = [0, 256], sizes = [256, 128], strides = [1, 1]} : vector<256x384xf32> to vector<256x128xf32>
    %13 = arith.truncf %12 : vector<256x128xf32> to vector<256x128xbf16>
    %c0_9 = arith.constant 0 : index
    %c0_10 = arith.constant 0 : index
    %14 = vector.load %arg6[%c0_9, %c0_10] : memref<256x128xbf16, #tpu.memory_space<vmem>>, vector<256x128xbf16>
    tpu.vector_store %arg6[%c0_9, %c0_10], %13 {strides = array<i32>} : memref<256x128xbf16, #tpu.memory_space<vmem>>, vector<256x128xbf16>,
    return
  }
  func.func @transform_0(%arg0: i32) -> (i32, i32) {
    %c0_i32 = arith.constant 0 : i32
    %c0_i32_0 = arith.constant 0 : i32
    return %arg0, %c0_i32 : i32, i32
  }
  func.func @transform_1(%arg0: i32) -> (i32, i32) {
    %c0_i32 = arith.constant 0 : i32
    %c0_i32_0 = arith.constant 0 : i32
    %c0_i32_1 = arith.constant 0 : i32
    return %c0_i32, %c0_i32_0 : i32, i32
  }
  func.func @transform_2(%arg0: i32) -> (i32, i32) {
    %c0_i32 = arith.constant 0 : i32
    %c0_i32_0 = arith.constant 0 : i32
    %c0_i32_1 = arith.constant 0 : i32
    return %c0_i32, %c0_i32_0 : i32, i32
  }
  func.func @transform_3(%arg0: i32) -> (i32, i32) {
    %c0_i32 = arith.constant 0 : i32
    %c0_i32_0 = arith.constant 0 : i32
    return %arg0, %c0_i32 : i32, i32
  }
  func.func @transform_4(%arg0: i32) -> (i32, i32) {
    %c0_i32 = arith.constant 0 : i32
    %c0_i32_0 = arith.constant 0 : i32
    return %arg0, %c0_i32 : i32, i32
  }
  func.func @transform_5(%arg0: i32) -> (i32, i32) {
    %c0_i32 = arith.constant 0 : i32
    %c0_i32_0 = arith.constant 0 : i32
    return %arg0, %c0_i32 : i32, i32
  }
}

</mosaic_0001>

<bundles_post_ra>
// kernel: tpu_custom_call.1
= control target key start
LH: loop header
LB: loop body
LE: loop exit
PB: predicated region body
PF: predicated region fallthrough
CT: control target
= control target key end

     0   :  { %s3104_s0 = inlined_call_operand.hbm [shape: bf16[512,128], index: 0, kind: input, shape index: {}]   ;;  %s3105_s1 = inlined_call_operand.hbm [shape: bf16[128,384], index: 1, kind: input, shape index: {}]   ;;  %s3106_s2 = inlined_call_operand.vmem [shape: f32[1,384], index: 2, kind: input, shape index: {}]   ;;  %s3107_s3 = inlined_call_operand.hbm [shape: bf16[512,128], index: 3, kind: output, shape index: {0}]   ;;  %s3108_s4 = inlined_call_operand.hbm [shape: bf16[512,128], index: 4, kind: output, shape index: {1}]   ;;  %s3109_s5 = inlined_call_operand.hbm [shape: bf16[512,128], index: 5, kind: output, shape index: {2}]  }
   0x1   :  { %3114 = sst [smem:[#allocation15_spill]] %s3104_s0 }
   0x2   :  { %11 = vsyncpa [#allocation3], 0 }
   0x3   :  { %13 = vsyncpa [#allocation3 + $0x1], 0 }
   0x4   :  { %14 = vsyncpa [#allocation6], 0 }
   0x5   :  { %15 = vsyncpa [#allocation4], 0 }
   0x6   :  { %17 = vsyncpa [#allocation4 + $0x1], 0 }
   0x7   :  { %18 = vsyncpa [#allocation9], 0 }
   0x8   :  { %20 = vsyncpa [#allocation9 + $0x1], 0  ;;  %s2607_s18 = smov 0   ;;  %s2609_s19 = smov 0  }
   0x9   :  { %s2611_s20 = smov 0   ;;  %s2613_s21 = smov 0  }
   0xa LB: > { %s2628_s22 = sadd.s32 4294967295, %s2563_s21   ;;  %s3113_s23 = sadd.s32 4294967294, %s2563_s21   ;;  %s2563_s21 = sphi %s2613_s21, %s3134_s21   ;;  %s2559_s20 = sphi %s2611_s20, %s3133_s20   ;;  %s2555_s19 = sphi %s2609_s19, %s3132_s19   ;;  %s2551_s18 = sphi %s2607_s18, %s3131_s18  }
   0xb   : > { %p46_p0 = scmp.ne.s32.totalorder %s2555_s19, %s2551_s18  ;;  %p3110_p1 = scmp.eq.s32.totalorder %s2628_s22, 0 }
   0xc   : > { %p118_p3 = scmp.eq.s32.totalorder %s3113_s23, 1  ;;  %p1621_p5 = scmp.ge.s32.totalorder %s2563_s21, 1 }
   0xd   : > { %p2639_p4 = por %p3110_p1, %p46_p0  ;;  %p177_p7 = scmp.lt.s32.totalorder %s2563_s21, 3 }
   0xe   : > { %p2644_p6 = por %p118_p3, %p46_p0  ;;  %s2565_s27 = smov [#allocation5]  }
   0xf   : > { %s3115_s24 = scalar_select %p2639_p4, 1, 0 }
  0x10   : > { %s3116_s25 = scalar_select %p2644_p6, 1, 0 }
  0x11   : > { %p2649_p8 = pnand %p1621_p5, %p177_p7  ;;  %s189_s28 = sshll.u32 %s2565_s27, 4  ;;  %s2653_s28 = int_to_ptr.vmem [resolvable:$true] %s189_s28 }
  0x12   : > { %s2665_s30 = sadd.s32 1, %s2563_s21   ;;  %s33_s6 = sadd.s32 1, %s2559_s20 }
  0x13   : > { %s3117_s26 = scalar_select %p2649_p8, 1, 0 }
  0x14   : > { %p2265_p9 = pneg %p2649_p8  ;;  %s30_s7 = ssub.s32 %s2563_s21, %s2665_s30 }
  0x15   : > { %s2375_s10 = scalar_lea.hbm %s3105_s1, 3072 }
  0x16   : > { %p2660_p11 = pnand %p2265_p9, %p3110_p1  ;;  %p2376_p12 = scmp.ne.s32.totalorder %s3105_s1, %s2375_s10 }
  0x17   : > { %p2382_p5 = scmp.lt.u32.totalorder %s2375_s10, %s3105_s1 }
  0x18   : > { %p2377_p13 = pneg %p2660_p11 }
  0x1a   : > { %p2378_p0 = pnand %p2377_p13, %p2376_p12 }
  0x1c   : > { %p2379_p3 = pneg %p2378_p0 }
  0x1e   : > { %p2384_p7 = pnand %p2382_p5, %p2379_p3 }
  0x20   : > { %2387 = shalt.err (!%p2384_p7)
}
  0x21   : > { %s2388_s15 = scalar_lea.vmem %s2653_s28, 3072  ;;  %p2396_p2 = scmp.lt.s32.totalorder %s2653_s28, %s2653_s28 }
  0x22   : > { %p2389_p9 = scmp.ne.s32.totalorder %s2653_s28, %s2388_s15  ;;  %p2397_p6 = scmp.lt.s32.totalorder %s2388_s15, %s2388_s15 }
  0x24   : > { %p2391_p10 = pnand %p2389_p9, %p2377_p13  ;;  %p2398_p4 = por %p2397_p6, %p2396_p2 }
  0x26   : > { %p2392_p1 = pneg %p2391_p10 }
  0x28   : > { %p2399_p8 = pnand %p2398_p4, %p2392_p1 }
  0x2a   : > { %2402 = shalt.err (!%p2399_p8)
}
  0x2b   : > { %s2566_s16 = smov 192   ;;  %s2567_s17 = smov 12  }
  0x2c   : > { %2268 = dma.hbm_to_vmem [thread:$0]  (!%p2660_p11), %s3105_s1, 3072, %s2653_s28, [#allocation6], %s2566_s16, %s2566_s16, %s2567_s17  }
  0x2d   : > { %p31_p2 = scmp.eq.s32.totalorder %s30_s7, 0  ;;  %p40_p1 = scmp.ne.s32.totalorder %s2559_s20, %s2555_s19 }
  0x2e   : > { %p41_p4 = scmp.eq.s32.totalorder %s2563_s21, 0  ;;  %p2284_p6 = scmp.lt.s32.totalorder %s2563_s21, 2 }
  0x2f   : > { %s2696_s9 = scalar_select %p31_p2, %s2559_s20, %s33_s6  }
  0x30   : > { %p42_p8 = por %p41_p4, %p40_p1  ;;  %p3119_p10 = scmp.eq.s32.totalorder %s2628_s22, 1 }
  0x31   : > { %s206_s11 = sand.u32 1, %s2559_s20   ;;  %s1780_s12 = sshll.u32 %s2563_s21, 11 }
  0x32   : > { %p2700_p12 = por %p3119_p10, %p40_p1  ;;  %s1624_s13 = sshll.u32 %s206_s11, 7 }
  0x33   : > { %s3121_s0 = sld [smem:[#allocation15_spill]]  ;;  %s210_s28 = scalar_lea.vmem [#allocation2], %s1624_s13 }
  0x34   : > { %s217_s6 = sshll.u32 %s210_s28, 4  ;;  %p2711_p11 = pnand %p2284_p6, %p42_p8  ;;  %s2715_s6 = int_to_ptr.vmem [resolvable:$true] %s217_s6 }
  0x35   : > { %s2717_s16 = scalar_lea.sflag [#allocation3], %s206_s11 }
  0x36   : > { %p2405_p0 = pneg %p2711_p11 }
  0x39   : > { %s2709_s15 = scalar_lea.hbm %s3121_s0, %s1780_s12  ;;  %s2408_s12 = scalar_lea.hbm %s3121_s0, 4096 }
  0x3a   : > { %s2403_s17 = scalar_lea.hbm %s2709_s15, 2048  ;;  %p2409_p7 = scmp.lt.u32.totalorder %s2709_s15, %s3121_s0 }
  0x3b   : > { %p2404_p13 = scmp.ne.s32.totalorder %s2709_s15, %s2403_s17  ;;  %p2410_p9 = scmp.lt.u32.totalorder %s2408_s12, %s2403_s17 }
  0x3c   : > { %p2412_p1 = scmp.lt.u32.totalorder %s2403_s17, %s2709_s15 }
  0x3d   : > { %p2406_p3 = pnand %p2405_p0, %p2404_p13  ;;  %p2411_p2 = por %p2410_p9, %p2409_p7 }
  0x3f   : > { %p2407_p5 = pneg %p2406_p3  ;;  %p2413_p4 = por %p2412_p1, %p2411_p2 }
  0x41   : > { %p2414_p6 = pnand %p2413_p4, %p2407_p5 }
  0x43   : > { %2417 = shalt.err (!%p2414_p6)
}
  0x44   : > { %s2418_s11 = scalar_lea.vmem %s2715_s6, 2048  ;;  %s2568_s14 = smov [#allocation2]  }
  0x45   : > { %p2419_p8 = scmp.ne.s32.totalorder %s2715_s6, %s2418_s11  ;;  %s2423_s28 = sshll.u32 %s2568_s14, 4  ;;  %s2424_s28 = int_to_ptr.vmem [resolvable:$false] %s2423_s28 }
  0x46   : > { %s2425_s27 = scalar_lea.vmem %s2424_s28, 4096  ;;  %p2426_p3 = scmp.lt.s32.totalorder %s2715_s6, %s2424_s28 }
  0x47   : > { %p2421_p10 = pnand %p2419_p8, %p2405_p0  ;;  %p2427_p7 = scmp.lt.s32.totalorder %s2425_s27, %s2418_s11 }
  0x49   : > { %p2422_p13 = pneg %p2421_p10  ;;  %p2428_p9 = por %p2427_p7, %p2426_p3 }
  0x4b   : > { %p2429_p2 = pnand %p2428_p9, %p2422_p13 }
  0x4d   : > { %2432 = shalt.err (!%p2429_p2)
}
  0x4e   : > { %s2569_s17 = smov 64   ;;  %s2570_s8 = smov 4  }
  0x4f   : > { %2272 = dma.hbm_to_vmem [thread:$0]  (!%p2711_p11), %s2709_s15, 2048, %s2715_s6, %s2717_s16, %s2569_s17, %s2569_s17, %s2570_s8  }
  0x50   : > { %p3123_p0 = scmp.ne.s32.totalorder %s3117_s26, 0 }
  0x51   : > { %s2748_s12 = sand.u32 (!%p3123_p0), 1, %s2555_s19   ;;  %p3124_p5 = scmp.ne.s32.totalorder (!%p3123_p0), %s3115_s24, 0 }
  0x52   : > { %229 = sbr.rel (%p3123_p0) target bundleno = 500 (0x1f4), region = 32  ;;  %s2751_s13 = sshll.u32 (!%p3123_p0), %s2748_s12, 7 }
  0x53   : > { %s232_s29 = scalar_lea.sflag (!%p3123_p0), [#allocation3], %s2748_s12  ;;  %s2755_s11 = scalar_lea.vmem (!%p3123_p0), [#allocation2], %s2751_s13 }
  0x59   : > { %2534 = dma.done.wait (%p3124_p5), %s232_s29, 2048  }
  0x5a   : > { %2536 = vsyncadd (%p3124_p5), %s232_s29, 4294965248  ;;  %p3125_p11 = scmp.eq.s32.totalorder %s2628_s22, 0 }
  0x5c   : > { %2538 = dma.done.wait (%p3125_p11), [#allocation6], 3072   ;;  %p3126_p1 = pmov %p3125_p11 }
  0x5d   : > { %v2571_v0 = vmov 0   ;;  %v2327_v1 = vld [vmem:[#allocation5 + $0x4] ss:$12 sps:$4 sm:$0xff]   ;;  %v2329_v2 = vld [vmem:[#allocation5] ss:$12 sps:$4 sm:$0xff]   ;;  %v2363_v30 = vld [vmem:[%s2755_s11 + $0x18] sm:$0xff]   ;;  %v347_v41 = vlaneseq }
  0x5e   : > { %2540 = vsyncadd (%p3126_p1), [#allocation6], 4294964224  ;;  %618 = vmatprep.mubr.bf16.mxu0 %v2571_v0  ;;  %738 = vmatprep.mubr.bf16.mxu1 %v2571_v0  ;;  %v2330_v3 = vld [vmem:[#allocation5 + $0x1c] ss:$12 sps:$4 sm:$0xff]   ;;  %v2332_v4 = vld [vmem:[#allocation5 + $0x18] ss:$12 sps:$4 sm:$0xff]  }
  0x5f   : > { %586 = vmatprep.subr.bf16.mxu0 %v2327_v1  ;;  %2237 = vmatprep.subr.bf16.mxu1 %v2327_v1  ;;  %v2333_v5 = vld [vmem:[#allocation5 + $0x34] ss:$12 sps:$4 sm:$0xff]   ;;  %v2335_v6 = vld [vmem:[#allocation5 + $0x30] ss:$12 sps:$4 sm:$0xff]   ;;  %v2336_v7 = vld [vmem:[#allocation5 + $0x4c] ss:$12 sps:$4 sm:$0xff]  }
  0x60   : > { %587 = vmatpush1.bf16.msra.mxu0 %v2329_v2  ;;  %2245 = vmatpush1.bf16.msra.mxu1 %v2329_v2  ;;  %v2338_v8 = vld [vmem:[#allocation5 + $0x48] ss:$12 sps:$4 sm:$0xff]   ;;  %v2339_v9 = vld [vmem:[#allocation5 + $0x64] ss:$12 sps:$4 sm:$0xff]   ;;  %v2341_v10 = vld [vmem:[#allocation5 + $0x60] ss:$12 sps:$4 sm:$0xff]  }
  0x61   : > { %588 = vmatprep.subr.bf16.mxu0 %v2330_v3  ;;  %2238 = vmatprep.subr.bf16.mxu1 %v2330_v3  ;;  %v2342_v11 = vld [vmem:[#allocation5 + $0x7c] ss:$12 sps:$4 sm:$0xff]   ;;  %v2344_v12 = vld [vmem:[#allocation5 + $0x78] ss:$12 sps:$4 sm:$0xff]   ;;  %v2345_v13 = vld [vmem:[#allocation5 + $0x94] ss:$12 sps:$4 sm:$0xff]  }
  0x62   : > { %v2347_v14 = vld [vmem:[#allocation5 + $0x90] ss:$12 sps:$4 sm:$0xff]   ;;  %v2348_v15 = vld [vmem:[#allocation5 + $0xac] ss:$12 sps:$4 sm:$0xff]   ;;  %v2350_v16 = vld [vmem:[#allocation5 + $0xa8] ss:$12 sps:$4 sm:$0xff]  }
  0x63   : > { %v2353_v17 = vld [vmem:[#allocation5 + $0x8] ss:$12 sps:$4 sm:$0xff]   ;;  %v2351_v18 = vld [vmem:[%s2755_s11] sm:$0xff]   ;;  %v2358_v24 = vld [vmem:[#allocation5 + $0x50] ss:$12 sps:$4 sm:$0xff]   ;;  %v2805_v42 = vshrl.u32 %v347_v41, 7 }
  0x64   : > { %589 = vmatpush1.bf16.msra.mxu0 %v2332_v4  ;;  %2246 = vmatpush1.bf16.msra.mxu1 %v2332_v4  ;;  %v2769_v19 = vld [vmem:[%s2755_s11 + $0x60] sm:$0xff]   ;;  %v2355_v22 = vld [vmem:[%s2755_s11 + $0x8] sm:$0xff]   ;;  %v2359_v26 = vld [vmem:[%s2755_s11 + $0x10] sm:$0xff]   ;;  %s2829_s15 = scalar_lea.vmem [#allocation7], %s2751_s13  ;;  %s2834_s6 = scalar_lea.vmem [#allocation8], %s2751_s13 }
  0x65   : > { %590 = vmatprep.subr.bf16.mxu0 %v2333_v5  ;;  %2239 = vmatprep.subr.bf16.mxu1 %v2333_v5  ;;  %v2354_v20 = vld [vmem:[#allocation5 + $0x20] ss:$12 sps:$4 sm:$0xff]   ;;  %v2357_v21 = vld [vmem:[#allocation5 + $0x38] ss:$12 sps:$4 sm:$0xff]   ;;  %v2361_v25 = vld [vmem:[#allocation5 + $0x68] ss:$12 sps:$4 sm:$0xff]  }
  0x66   : > { %v2776_v23 = vld [vmem:[%s2755_s11 + $0x68] sm:$0xff]   ;;  %v2360_v27 = vld [vmem:[%s2755_s11 + $0x70] sm:$0xff]   ;;  %v2365_v29 = vld [vmem:[#allocation5 + $0x98] ss:$12 sps:$4 sm:$0xff]   ;;  %v349_v43 = vsub.s32 0, %v2805_v42  ;;  %v353_v45 = vsub.s32 1, %v2805_v42 }
  0x67   : > { %v2362_v28 = vld [vmem:[#allocation5 + $0x80] ss:$12 sps:$4 sm:$0xff]   ;;  %v2364_v31 = vld [vmem:[%s2755_s11 + $0x78] sm:$0xff]   ;;  %v2369_v35 = vld [vmem:[%s2755_s11 + $0x30] sm:$0xff]   ;;  %s2888_s7 = scalar_lea.vmem [#allocation10], %s2751_s13  ;;  %s1877_s14 = sshll.u32 %s2628_s22, 11 }
  0x68   : > { %591 = vmatpush1.bf16.msra.mxu0 %v2335_v6  ;;  %2247 = vmatpush1.bf16.msra.mxu1 %v2335_v6  ;;  %v2366_v32 = vld [vmem:[#allocation5 + $0xb0] ss:$12 sps:$4 sm:$0xff]   ;;  %v2367_v33 = vld [vmem:[%s2755_s11 + $0x20] sm:$0xff]   ;;  %v2368_v34 = vld [vmem:[%s2755_s11 + $0x28] sm:$0xff]   ;;  %s1444_s28 = sshll.u32 %s2829_s15, 4  ;;  %s1460_s27 = sshll.u32 %s2834_s6, 4  ;;  %s2983_s28 = int_to_ptr.vmem [resolvable:$true] %s1444_s28  ;;  %s2990_s27 = int_to_ptr.vmem [resolvable:$true] %s1460_s27 }
  0x69   : > { %592 = vmatprep.subr.bf16.mxu0 %v2336_v7  ;;  %2240 = vmatprep.subr.bf16.mxu1 %v2336_v7  ;;  %v2370_v36 = vld [vmem:[%s2755_s11 + $0x38] sm:$0xff]   ;;  %v2371_v37 = vld [vmem:[%s2755_s11 + $0x40] sm:$0xff]   ;;  %v2372_v38 = vld [vmem:[%s2755_s11 + $0x48] sm:$0xff]   ;;  %s1476_s17 = sshll.u32 %s2888_s7, 4  ;;  %s2981_s29 = scalar_lea.hbm %s3107_s3, %s1877_s14  ;;  %s2999_s17 = int_to_ptr.vmem [resolvable:$true] %s1476_s17 }
  0x6a   : > { %v2373_v39 = vld [vmem:[%s2755_s11 + $0x50] sm:$0xff]   ;;  %v2374_v40 = vld [vmem:[%s2755_s11 + $0x58] sm:$0xff]   ;;  %v2811_v44 = vld [vmem:[%s3106_s2] sm:$0x7]  ;;  %s2988_s26 = scalar_lea.hbm %s3108_s4, %s1877_s14  ;;  %s2997_s23 = scalar_lea.hbm %s3109_s5, %s1877_s14 }
  0x6b   : > { %v2815_v46 = vrot.slane %v2811_v44, %v349_v43  ;;  %v2818_v49 = vrot.slane %v2811_v44, %v353_v45  ;;  %s1421_s16 = scalar_lea.sflag [#allocation4], %s2748_s12  ;;  %s2433_s0 = scalar_lea.vmem %s2983_s28, 2048 }
  0x6c   : > { %593 = vmatpush1.bf16.msra.mxu0 %v2338_v8  ;;  %2248 = vmatpush1.bf16.msra.mxu1 %v2338_v8  ;;  %p2434_p4 = scmp.ne.s32.totalorder %s2983_s28, %s2433_s0  ;;  %s2572_s11 = smov [#allocation7]  }
  0x6d   : > { %594 = vmatprep.subr.bf16.mxu0 %v2339_v9  ;;  %2241 = vmatprep.subr.bf16.mxu1 %v2339_v9  ;;  %s2437_s24 = sshll.u32 %s2572_s11, 4  ;;  %s2438_s24 = int_to_ptr.vmem [resolvable:$false] %s2437_s24 }
  0x6e   : > { %p2435_p6 = pnand %p2434_p4, %p2700_p12  ;;  %p2440_p10 = scmp.lt.s32.totalorder %s2983_s28, %s2438_s24 }
  0x70   : > { %595 = vmatpush1.bf16.msra.mxu0 %v2341_v10  ;;  %2249 = vmatpush1.bf16.msra.mxu1 %v2341_v10  ;;  %p2436_p8 = pneg %p2435_p6 }
  0x71   : > { %596 = vmatprep.subr.bf16.mxu0 %v2342_v11  ;;  %2242 = vmatprep.subr.bf16.mxu1 %v2342_v11 }
  0x74   : > { %597 = vmatpush1.bf16.msra.mxu0 %v2344_v12  ;;  %2250 = vmatpush1.bf16.msra.mxu1 %v2344_v12 }
  0x75   : > { %598 = vmatprep.subr.bf16.mxu0 %v2345_v13  ;;  %2243 = vmatprep.subr.bf16.mxu1 %v2345_v13 }
  0x78   : > { %599 = vmatpush1.bf16.msra.mxu0 %v2347_v14  ;;  %2251 = vmatpush1.bf16.msra.mxu1 %v2347_v14 }
  0x79   : > { %600 = vmatprep.subr.bf16.mxu0 %v2348_v15  ;;  %2244 = vmatprep.subr.bf16.mxu1 %v2348_v15 }
  0x7c   : > { %601 = vmatpush1.bf16.msra.mxu0 %v2350_v16  ;;  %2252 = vmatpush1.bf16.msra.mxu1 %v2350_v16 }
  0x7d   : > { %2189 = vmatprep.subr.bf16.mxu1 %v2353_v17 }
  0x7f   : > { %619 = vmatmul.mubr.bf16.vlgmr.msra.gmra.mrb[0].mxu0 %v2351_v18  ;;  %739 = vmatmul.mubr.bf16.vlgmr.msra.gmra.mrb[0].mxu1 %v2769_v19 }
  0x80   : > { %2190 = vmatpush3.bf16.msra.mxu1 %v2353_v17  ;;  %628 = vmatprep.mubr.bf16.mxu0 %v2571_v0 }
  0x81   : > { %2191 = vmatprep.subr.bf16.mxu1 %v2354_v20  ;;  %748 = vmatprep.mubr.bf16.mxu1 %v2571_v0 }
  0x84   : > { %2192 = vmatpush3.bf16.msra.mxu1 %v2354_v20 }
  0x85   : > { %2193 = vmatprep.subr.bf16.mxu1 %v2357_v21 }
  0x87   : > { %629 = vmatmul.mubr.bf16.gmra.mrb[4].mxu0 %v2355_v22  ;;  %749 = vmatmul.mubr.bf16.gmra.mrb[4].mxu1 %v2776_v23 }
  0x88   : > { %2194 = vmatpush3.bf16.msra.mxu1 %v2357_v21  ;;  %638 = vmatprep.mubr.bf16.mxu0 %v2571_v0 }
  0x89   : > { %2195 = vmatprep.subr.bf16.mxu1 %v2358_v24  ;;  %758 = vmatprep.mubr.bf16.mxu1 %v2571_v0 }
  0x8c   : > { %2196 = vmatpush3.bf16.msra.mxu1 %v2358_v24 }
  0x8d   : > { %2197 = vmatprep.subr.bf16.mxu1 %v2361_v25 }
  0x8f   : > { %639 = vmatmul.mubr.bf16.gmra.mrb[8].mxu0 %v2359_v26  ;;  %759 = vmatmul.mubr.bf16.gmra.mrb[8].mxu1 %v2360_v27 }
  0x90   : > { %2198 = vmatpush3.bf16.msra.mxu1 %v2361_v25  ;;  %648 = vmatprep.mubr.bf16.mxu0 %v2571_v0 }
  0x91   : > { %2199 = vmatprep.subr.bf16.mxu1 %v2362_v28  ;;  %768 = vmatprep.mubr.bf16.mxu1 %v2571_v0 }
  0x94   : > { %2200 = vmatpush3.bf16.msra.mxu1 %v2362_v28 }
  0x95   : > { %2201 = vmatprep.subr.bf16.mxu1 %v2365_v29 }
  0x97   : > { %649 = vmatmul.mubr.bf16.gmra.mrb[12].mxu0 %v2363_v30  ;;  %769 = vmatmul.mubr.bf16.gmra.mrb[12].mxu1 %v2364_v31 }
  0x98   : > { %2202 = vmatpush3.bf16.msra.mxu1 %v2365_v29  ;;  %658 = vmatprep.mubr.bf16.mxu0 %v2571_v0 }
  0x99   : > { %2203 = vmatprep.subr.bf16.mxu1 %v2366_v32  ;;  %2205 = vmatprep.mubr.bf16.mxu1 %v2351_v18 }
  0x9c   : > { %2204 = vmatpush3.bf16.msra.mxu1 %v2366_v32 }
  0x9f   : > { %659 = vmatmul.mubr.bf16.gmra.mrb[16].mxu0 %v2367_v33  ;;  %2206 = vmatmul.mubr.bf16.vlgmr.msra.gmra.mrb[16].mxu1 %v2355_v22 }
  0xa0   : > { %668 = vmatprep.mubr.bf16.mxu0 %v2571_v0  ;;  %2209 = vmatprep.mubr.bf16.mxu1 %v2359_v26 }
  0xa7   : > { %669 = vmatmul.mubr.bf16.gmra.mrb[20].mxu0 %v2368_v34  ;;  %2210 = vmatmul.mubr.bf16.gmra.mrb[20].mxu1 %v2363_v30 }
  0xa8   : > { %678 = vmatprep.mubr.bf16.mxu0 %v2571_v0  ;;  %2213 = vmatprep.mubr.bf16.mxu1 %v2367_v33 }
  0xaf   : > { %679 = vmatmul.mubr.bf16.gmra.mrb[24].mxu0 %v2369_v35  ;;  %2214 = vmatmul.mubr.bf16.gmra.mrb[24].mxu1 %v2368_v34 }
  0xb0   : > { %688 = vmatprep.mubr.bf16.mxu0 %v2571_v0  ;;  %2217 = vmatprep.mubr.bf16.mxu1 %v2369_v35 }
  0xb7   : > { %689 = vmatmul.mubr.bf16.gmra.mrb[28].mxu0 %v2370_v36  ;;  %2218 = vmatmul.mubr.bf16.gmra.mrb[28].mxu1 %v2370_v36 }
  0xb8   : > { %698 = vmatprep.mubr.bf16.mxu0 %v2571_v0  ;;  %2221 = vmatprep.mubr.bf16.mxu1 %v2371_v37 }
  0xbf   : > { %699 = vmatmul.mubr.bf16.gmra.mrb[32].mxu0 %v2371_v37  ;;  %2222 = vmatmul.mubr.bf16.gmra.mrb[32].mxu1 %v2372_v38 }
  0xc0   : > { %708 = vmatprep.mubr.bf16.mxu0 %v2571_v0  ;;  %2225 = vmatprep.mubr.bf16.mxu1 %v2373_v39 }
  0xc7   : > { %709 = vmatmul.mubr.bf16.gmra.mrb[36].mxu0 %v2372_v38  ;;  %2226 = vmatmul.mubr.bf16.gmra.mrb[36].mxu1 %v2374_v40 }
  0xc8   : > { %718 = vmatprep.mubr.bf16.mxu0 %v2571_v0  ;;  %2229 = vmatprep.mubr.bf16.mxu1 %v2769_v19 }
  0xcf   : > { %719 = vmatmul.mubr.bf16.gmra.mrb[40].mxu0 %v2373_v39  ;;  %2230 = vmatmul.mubr.bf16.gmra.mrb[40].mxu1 %v2776_v23 }
  0xd0   : > { %728 = vmatprep.mubr.bf16.mxu0 %v2571_v0  ;;  %2233 = vmatprep.mubr.bf16.mxu1 %v2360_v27 }
  0xd7   : > { %729 = vmatmul.mubr.bf16.gmra.mrb[44].mxu0 %v2374_v40  ;;  %2234 = vmatmul.mubr.bf16.gmra.mrb[44].mxu1 %v2364_v31 }
 0x152   : > { %v620_v47 = vpop.f32.mrb[0].mxu0  ;;  %v740_v48 = vpop.f32.mrb[0].mxu1 }
 0x153   : > { %v741_v50 = vadd.f32 %v740_v48, %v2815_v46  ;;  %v622_v51 = vpop.f32.mrb[1].mxu0  ;;  %v742_v52 = vpop.f32.mrb[1].mxu1  ;;  %v621_v55 = vadd.f32 %v620_v47, %v2815_v46 }
 0x154   : > { %v624_v53 = vpop.f32.mrb[2].mxu0  ;;  %v744_v54 = vpop.f32.mrb[2].mxu1  ;;  %v623_v60 = vadd.f32 %v622_v51, %v2818_v49  ;;  %v743_v61 = vadd.f32 %v742_v52, %v2818_v49 }
 0x155   : > { %v625_v56 = vadd.f32 %v624_v53, %v2815_v46  ;;  %v745_v57 = vadd.f32 %v744_v54, %v2815_v46  ;;  %v626_v58 = vpop.f32.mrb[3].mxu0  ;;  %v746_v59 = vpop.f32.mrb[3].mxu1  ;;  %v357_v53 = vsub.s32 2, %v2805_v42 }
 0x156   : > { %v627_v62 = vadd.f32 %v626_v58, %v2818_v49  ;;  %v747_v63 = vadd.f32 %v746_v59, %v2818_v49 }
 0x157   : > { %v1883_v0 = vpack.c.bf16 %v625_v56, %v621_v55  ;;  %v1943_v1 = vpack.c.bf16 %v745_v57, %v741_v50 }
 0x158   : > { %v1963_v2 = vpack.c.bf16 %v627_v62, %v623_v60  ;;  %v2023_v3 = vpack.c.bf16 %v747_v63, %v743_v61 }
 0x159   : > { %1884 = vst [vmem:[%s2829_s15] sm:$0xff] %v1883_v0   ;;  %2131 = vst [vmem:[%s2829_s15 + $0x60] sm:$0xff] %v1943_v1  }
 0x15a   : > { %1964 = vst [vmem:[%s2834_s6] sm:$0xff] %v1963_v2   ;;  %2146 = vst [vmem:[%s2834_s6 + $0x60] sm:$0xff] %v2023_v3   ;;  %v630_v4 = vpop.f32.mrb[4].mxu0  ;;  %v750_v5 = vpop.f32.mrb[4].mxu1  ;;  %v2872_v2 = vrot.slane %v2811_v44, %v357_v53 }
 0x15b   : > { %v751_v6 = vadd.f32 %v750_v5, %v2815_v46  ;;  %v632_v7 = vpop.f32.mrb[5].mxu0  ;;  %v752_v8 = vpop.f32.mrb[5].mxu1  ;;  %v631_v11 = vadd.f32 %v630_v4, %v2815_v46 }
 0x15c   : > { %v634_v9 = vpop.f32.mrb[6].mxu0  ;;  %v754_v10 = vpop.f32.mrb[6].mxu1  ;;  %v633_v16 = vadd.f32 %v632_v7, %v2818_v49  ;;  %v753_v17 = vadd.f32 %v752_v8, %v2818_v49 }
 0x15d   : > { %v635_v12 = vadd.f32 %v634_v9, %v2815_v46  ;;  %v755_v13 = vadd.f32 %v754_v10, %v2815_v46  ;;  %v636_v14 = vpop.f32.mrb[7].mxu0  ;;  %v756_v15 = vpop.f32.mrb[7].mxu1 }
 0x15e   : > { %v637_v18 = vadd.f32 %v636_v14, %v2818_v49  ;;  %v757_v19 = vadd.f32 %v756_v15, %v2818_v49 }
 0x15f   : > { %v1888_v20 = vpack.c.bf16 %v635_v12, %v631_v11  ;;  %v1948_v21 = vpack.c.bf16 %v755_v13, %v751_v6 }
 0x160   : > { %v1968_v22 = vpack.c.bf16 %v637_v18, %v633_v16  ;;  %v2028_v23 = vpack.c.bf16 %v757_v19, %v753_v17 }
 0x161   : > { %2120 = vst [vmem:[%s2829_s15 + $0x8] sm:$0xff] %v1888_v20   ;;  %2132 = vst [vmem:[%s2829_s15 + $0x68] sm:$0xff] %v1948_v21  }
 0x162   : > { %2135 = vst [vmem:[%s2834_s6 + $0x8] sm:$0xff] %v1968_v22   ;;  %2147 = vst [vmem:[%s2834_s6 + $0x68] sm:$0xff] %v2028_v23   ;;  %v640_v24 = vpop.f32.mrb[8].mxu0  ;;  %v760_v25 = vpop.f32.mrb[8].mxu1 }
 0x163   : > { %v761_v26 = vadd.f32 %v760_v25, %v2815_v46  ;;  %v642_v27 = vpop.f32.mrb[9].mxu0  ;;  %v762_v28 = vpop.f32.mrb[9].mxu1  ;;  %v641_v31 = vadd.f32 %v640_v24, %v2815_v46 }
 0x164   : > { %v644_v29 = vpop.f32.mrb[10].mxu0  ;;  %v764_v30 = vpop.f32.mrb[10].mxu1  ;;  %v643_v36 = vadd.f32 %v642_v27, %v2818_v49  ;;  %v763_v37 = vadd.f32 %v762_v28, %v2818_v49 }
 0x165   : > { %v645_v32 = vadd.f32 %v644_v29, %v2815_v46  ;;  %v765_v33 = vadd.f32 %v764_v30, %v2815_v46  ;;  %v646_v34 = vpop.f32.mrb[11].mxu0  ;;  %v766_v35 = vpop.f32.mrb[11].mxu1 }
 0x166   : > { %v647_v38 = vadd.f32 %v646_v34, %v2818_v49  ;;  %v767_v39 = vadd.f32 %v766_v35, %v2818_v49 }
 0x167   : > { %v1893_v40 = vpack.c.bf16 %v645_v32, %v641_v31  ;;  %v1953_v41 = vpack.c.bf16 %v765_v33, %v761_v26 }
 0x168   : > { %v1973_v43 = vpack.c.bf16 %v647_v38, %v643_v36  ;;  %v2033_v45 = vpack.c.bf16 %v767_v39, %v763_v37 }
 0x169   : > { %2121 = vst [vmem:[%s2829_s15 + $0x10] sm:$0xff] %v1893_v40   ;;  %2133 = vst [vmem:[%s2829_s15 + $0x70] sm:$0xff] %v1953_v41  }
 0x16a   : > { %2136 = vst [vmem:[%s2834_s6 + $0x10] sm:$0xff] %v1973_v43   ;;  %2148 = vst [vmem:[%s2834_s6 + $0x70] sm:$0xff] %v2033_v45   ;;  %v650_v47 = vpop.f32.mrb[12].mxu0  ;;  %v770_v48 = vpop.f32.mrb[12].mxu1 }
 0x16b   : > { %v771_v50 = vadd.f32 %v770_v48, %v2815_v46  ;;  %v652_v51 = vpop.f32.mrb[13].mxu0  ;;  %v772_v52 = vpop.f32.mrb[13].mxu1  ;;  %v651_v56 = vadd.f32 %v650_v47, %v2815_v46 }
 0x16c   : > { %v654_v54 = vpop.f32.mrb[14].mxu0  ;;  %v774_v55 = vpop.f32.mrb[14].mxu1  ;;  %v653_v61 = vadd.f32 %v652_v51, %v2818_v49  ;;  %v773_v62 = vadd.f32 %v772_v52, %v2818_v49 }
 0x16d   : > { %v655_v57 = vadd.f32 %v654_v54, %v2815_v46  ;;  %v775_v58 = vadd.f32 %v774_v55, %v2815_v46  ;;  %v656_v59 = vpop.f32.mrb[15].mxu0  ;;  %v776_v60 = vpop.f32.mrb[15].mxu1 }
 0x16e   : > { %v657_v42 = vadd.f32 %v656_v59, %v2818_v49  ;;  %v777_v63 = vadd.f32 %v776_v60, %v2818_v49 }
 0x16f   : > { %v1898_v0 = vpack.c.bf16 %v655_v57, %v651_v56  ;;  %v1958_v1 = vpack.c.bf16 %v775_v58, %v771_v50 }
 0x170   : > { %v1978_v3 = vpack.c.bf16 %v657_v42, %v653_v61  ;;  %v2038_v4 = vpack.c.bf16 %v777_v63, %v773_v62 }
 0x171   : > { %2122 = vst [vmem:[%s2829_s15 + $0x18] sm:$0xff] %v1898_v0   ;;  %2134 = vst [vmem:[%s2829_s15 + $0x78] sm:$0xff] %v1958_v1  }
 0x172   : > { %2137 = vst [vmem:[%s2834_s6 + $0x18] sm:$0xff] %v1978_v3   ;;  %2149 = vst [vmem:[%s2834_s6 + $0x78] sm:$0xff] %v2038_v4   ;;  %v660_v5 = vpop.f32.mrb[16].mxu0  ;;  %v2207_v6 = vpop.f32.mrb[16].mxu1 }
 0x173   : > { %v822_v7 = vadd.f32 %v2207_v6, %v2872_v2  ;;  %v662_v8 = vpop.f32.mrb[17].mxu0  ;;  %v813_v9 = vpop.f32.mrb[17].mxu1  ;;  %v661_v12 = vadd.f32 %v660_v5, %v2815_v46 }
 0x174   : > { %v664_v10 = vpop.f32.mrb[18].mxu0  ;;  %v2208_v11 = vpop.f32.mrb[18].mxu1  ;;  %v663_v16 = vadd.f32 %v662_v8, %v2818_v49  ;;  %v814_v17 = vadd.f32 %v813_v9, %v2872_v2 }
 0x175   : > { %v665_v44 = vadd.f32 %v664_v10, %v2815_v46  ;;  %v825_v13 = vadd.f32 %v2208_v11, %v2872_v2  ;;  %v666_v14 = vpop.f32.mrb[19].mxu0  ;;  %v816_v15 = vpop.f32.mrb[19].mxu1 }
 0x176   : > { %v667_v18 = vadd.f32 %v666_v14, %v2818_v49  ;;  %v817_v19 = vadd.f32 %v816_v15, %v2872_v2 }
 0x177   : > { %v1903_v20 = vpack.c.bf16 %v665_v44, %v661_v12  ;;  %v2048_v21 = vpack.c.bf16 %v825_v13, %v822_v7 }
 0x178   : > { %v1983_v22 = vpack.c.bf16 %v667_v18, %v663_v16  ;;  %v2043_v23 = vpack.c.bf16 %v817_v19, %v814_v17 }
 0x179   : > { %2123 = vst [vmem:[%s2829_s15 + $0x20] sm:$0xff] %v1903_v20   ;;  %2150 = vst [vmem:[%s2888_s7 + $0x8] sm:$0xff] %v2048_v21  }
 0x17a   : > { %2138 = vst [vmem:[%s2834_s6 + $0x20] sm:$0xff] %v1983_v22   ;;  %2044 = vst [vmem:[%s2888_s7] sm:$0xff] %v2043_v23   ;;  %v670_v24 = vpop.f32.mrb[20].mxu0  ;;  %v2211_v25 = vpop.f32.mrb[20].mxu1 }
 0x17b   : > { %v838_v26 = vadd.f32 %v2211_v25, %v2872_v2  ;;  %v672_v27 = vpop.f32.mrb[21].mxu0  ;;  %v829_v28 = vpop.f32.mrb[21].mxu1  ;;  %v671_v31 = vadd.f32 %v670_v24, %v2815_v46 }
 0x17c   : > { %v674_v29 = vpop.f32.mrb[22].mxu0  ;;  %v2212_v30 = vpop.f32.mrb[22].mxu1  ;;  %v673_v36 = vadd.f32 %v672_v27, %v2818_v49  ;;  %v830_v37 = vadd.f32 %v829_v28, %v2872_v2 }
 0x17d   : > { %v675_v32 = vadd.f32 %v674_v29, %v2815_v46  ;;  %v841_v33 = vadd.f32 %v2212_v30, %v2872_v2  ;;  %v676_v34 = vpop.f32.mrb[23].mxu0  ;;  %v832_v35 = vpop.f32.mrb[23].mxu1 }
 0x17e   : > { %v677_v38 = vadd.f32 %v676_v34, %v2818_v49  ;;  %v833_v39 = vadd.f32 %v832_v35, %v2872_v2 }
 0x17f   : > { %v1908_v40 = vpack.c.bf16 %v675_v32, %v671_v31  ;;  %v2058_v41 = vpack.c.bf16 %v841_v33, %v838_v26 }
 0x180   : > { %v1988_v43 = vpack.c.bf16 %v677_v38, %v673_v36  ;;  %v2053_v45 = vpack.c.bf16 %v833_v39, %v830_v37 }
 0x181   : > { %2124 = vst [vmem:[%s2829_s15 + $0x28] sm:$0xff] %v1908_v40   ;;  %2152 = vst [vmem:[%s2888_s7 + $0x18] sm:$0xff] %v2058_v41  }
 0x182   : > { %2139 = vst [vmem:[%s2834_s6 + $0x28] sm:$0xff] %v1988_v43   ;;  %2151 = vst [vmem:[%s2888_s7 + $0x10] sm:$0xff] %v2053_v45   ;;  %v680_v47 = vpop.f32.mrb[24].mxu0  ;;  %v2215_v48 = vpop.f32.mrb[24].mxu1 }
 0x183   : > { %v854_v50 = vadd.f32 %v2215_v48, %v2872_v2  ;;  %v682_v51 = vpop.f32.mrb[25].mxu0  ;;  %v845_v52 = vpop.f32.mrb[25].mxu1  ;;  %v681_v55 = vadd.f32 %v680_v47, %v2815_v46 }
 0x184   : > { %v684_v53 = vpop.f32.mrb[26].mxu0  ;;  %v2216_v54 = vpop.f32.mrb[26].mxu1  ;;  %v683_v60 = vadd.f32 %v682_v51, %v2818_v49  ;;  %v846_v61 = vadd.f32 %v845_v52, %v2872_v2 }
 0x185   : > { %v685_v56 = vadd.f32 %v684_v53, %v2815_v46  ;;  %v857_v57 = vadd.f32 %v2216_v54, %v2872_v2  ;;  %v686_v58 = vpop.f32.mrb[27].mxu0  ;;  %v848_v59 = vpop.f32.mrb[27].mxu1 }
 0x186   : > { %v687_v62 = vadd.f32 %v686_v58, %v2818_v49  ;;  %v849_v42 = vadd.f32 %v848_v59, %v2872_v2 }
 0x187   : > { %v1913_v63 = vpack.c.bf16 %v685_v56, %v681_v55  ;;  %v2068_v0 = vpack.c.bf16 %v857_v57, %v854_v50 }
 0x188   : > { %v1993_v1 = vpack.c.bf16 %v687_v62, %v683_v60  ;;  %v2063_v3 = vpack.c.bf16 %v849_v42, %v846_v61 }
 0x189   : > { %2125 = vst [vmem:[%s2829_s15 + $0x30] sm:$0xff] %v1913_v63   ;;  %2154 = vst [vmem:[%s2888_s7 + $0x28] sm:$0xff] %v2068_v0  }
 0x18a   : > { %2140 = vst [vmem:[%s2834_s6 + $0x30] sm:$0xff] %v1993_v1   ;;  %2153 = vst [vmem:[%s2888_s7 + $0x20] sm:$0xff] %v2063_v3   ;;  %v690_v4 = vpop.f32.mrb[28].mxu0  ;;  %v2219_v5 = vpop.f32.mrb[28].mxu1 }
 0x18b   : > { %v870_v6 = vadd.f32 %v2219_v5, %v2872_v2  ;;  %v692_v7 = vpop.f32.mrb[29].mxu0  ;;  %v861_v8 = vpop.f32.mrb[29].mxu1  ;;  %v691_v11 = vadd.f32 %v690_v4, %v2815_v46 }
 0x18c   : > { %v694_v9 = vpop.f32.mrb[30].mxu0  ;;  %v2220_v10 = vpop.f32.mrb[30].mxu1  ;;  %v693_v15 = vadd.f32 %v692_v7, %v2818_v49  ;;  %v862_v16 = vadd.f32 %v861_v8, %v2872_v2 }
 0x18d   : > { %v695_v12 = vadd.f32 %v694_v9, %v2815_v46  ;;  %v873_v44 = vadd.f32 %v2220_v10, %v2872_v2  ;;  %v696_v13 = vpop.f32.mrb[31].mxu0  ;;  %v864_v14 = vpop.f32.mrb[31].mxu1 }
 0x18e   : > { %v697_v17 = vadd.f32 %v696_v13, %v2818_v49  ;;  %v865_v18 = vadd.f32 %v864_v14, %v2872_v2 }
 0x18f   : > { %v1918_v19 = vpack.c.bf16 %v695_v12, %v691_v11  ;;  %v2078_v20 = vpack.c.bf16 %v873_v44, %v870_v6 }
 0x190   : > { %v1998_v21 = vpack.c.bf16 %v697_v17, %v693_v15  ;;  %v2073_v22 = vpack.c.bf16 %v865_v18, %v862_v16 }
 0x191   : > { %2126 = vst [vmem:[%s2829_s15 + $0x38] sm:$0xff] %v1918_v19   ;;  %2156 = vst [vmem:[%s2888_s7 + $0x38] sm:$0xff] %v2078_v20  }
 0x192   : > { %2141 = vst [vmem:[%s2834_s6 + $0x38] sm:$0xff] %v1998_v21   ;;  %2155 = vst [vmem:[%s2888_s7 + $0x30] sm:$0xff] %v2073_v22   ;;  %v700_v23 = vpop.f32.mrb[32].mxu0  ;;  %v2223_v24 = vpop.f32.mrb[32].mxu1 }
 0x193   : > { %v886_v25 = vadd.f32 %v2223_v24, %v2872_v2  ;;  %v702_v26 = vpop.f32.mrb[33].mxu0  ;;  %v877_v27 = vpop.f32.mrb[33].mxu1  ;;  %v701_v30 = vadd.f32 %v700_v23, %v2815_v46 }
 0x194   : > { %v704_v28 = vpop.f32.mrb[34].mxu0  ;;  %v2224_v29 = vpop.f32.mrb[34].mxu1  ;;  %v703_v35 = vadd.f32 %v702_v26, %v2818_v49  ;;  %v878_v36 = vadd.f32 %v877_v27, %v2872_v2 }
 0x195   : > { %v705_v31 = vadd.f32 %v704_v28, %v2815_v46  ;;  %v889_v32 = vadd.f32 %v2224_v29, %v2872_v2  ;;  %v706_v33 = vpop.f32.mrb[35].mxu0  ;;  %v880_v34 = vpop.f32.mrb[35].mxu1 }
 0x196   : > { %v707_v37 = vadd.f32 %v706_v33, %v2818_v49  ;;  %v881_v38 = vadd.f32 %v880_v34, %v2872_v2 }
 0x197   : > { %v1923_v39 = vpack.c.bf16 %v705_v31, %v701_v30  ;;  %v2088_v40 = vpack.c.bf16 %v889_v32, %v886_v25 }
 0x198   : > { %v2003_v41 = vpack.c.bf16 %v707_v37, %v703_v35  ;;  %v2083_v43 = vpack.c.bf16 %v881_v38, %v878_v36 }
 0x199   : > { %2127 = vst [vmem:[%s2829_s15 + $0x40] sm:$0xff] %v1923_v39   ;;  %2158 = vst [vmem:[%s2888_s7 + $0x48] sm:$0xff] %v2088_v40  }
 0x19a   : > { %2142 = vst [vmem:[%s2834_s6 + $0x40] sm:$0xff] %v2003_v41   ;;  %2157 = vst [vmem:[%s2888_s7 + $0x40] sm:$0xff] %v2083_v43   ;;  %v710_v45 = vpop.f32.mrb[36].mxu0  ;;  %v2227_v47 = vpop.f32.mrb[36].mxu1 }
 0x19b   : > { %v902_v48 = vadd.f32 %v2227_v47, %v2872_v2  ;;  %v712_v50 = vpop.f32.mrb[37].mxu0  ;;  %v893_v51 = vpop.f32.mrb[37].mxu1  ;;  %v711_v54 = vadd.f32 %v710_v45, %v2815_v46 }
 0x19c   : > { %v714_v52 = vpop.f32.mrb[38].mxu0  ;;  %v2228_v53 = vpop.f32.mrb[38].mxu1  ;;  %v713_v59 = vadd.f32 %v712_v50, %v2818_v49  ;;  %v894_v60 = vadd.f32 %v893_v51, %v2872_v2 }
 0x19d   : > { %v715_v55 = vadd.f32 %v714_v52, %v2815_v46  ;;  %v905_v56 = vadd.f32 %v2228_v53, %v2872_v2  ;;  %v716_v57 = vpop.f32.mrb[39].mxu0  ;;  %v896_v58 = vpop.f32.mrb[39].mxu1 }
 0x19e   : > { %v717_v61 = vadd.f32 %v716_v57, %v2818_v49  ;;  %v897_v62 = vadd.f32 %v896_v58, %v2872_v2 }
 0x19f   : > { %v1928_v42 = vpack.c.bf16 %v715_v55, %v711_v54  ;;  %v2098_v63 = vpack.c.bf16 %v905_v56, %v902_v48 }
 0x1a0   : > { %v2008_v0 = vpack.c.bf16 %v717_v61, %v713_v59  ;;  %v2093_v1 = vpack.c.bf16 %v897_v62, %v894_v60 }
 0x1a1   : > { %2128 = vst [vmem:[%s2829_s15 + $0x48] sm:$0xff] %v1928_v42   ;;  %2160 = vst [vmem:[%s2888_s7 + $0x58] sm:$0xff] %v2098_v63  }
 0x1a2   : > { %2143 = vst [vmem:[%s2834_s6 + $0x48] sm:$0xff] %v2008_v0   ;;  %2159 = vst [vmem:[%s2888_s7 + $0x50] sm:$0xff] %v2093_v1   ;;  %v720_v3 = vpop.f32.mrb[40].mxu0  ;;  %v2231_v4 = vpop.f32.mrb[40].mxu1 }
 0x1a3   : > { %v918_v5 = vadd.f32 %v2231_v4, %v2872_v2  ;;  %v722_v6 = vpop.f32.mrb[41].mxu0  ;;  %v909_v7 = vpop.f32.mrb[41].mxu1  ;;  %v721_v10 = vadd.f32 %v720_v3, %v2815_v46 }
 0x1a4   : > { %v724_v8 = vpop.f32.mrb[42].mxu0  ;;  %v2232_v9 = vpop.f32.mrb[42].mxu1  ;;  %v723_v14 = vadd.f32 %v722_v6, %v2818_v49  ;;  %v910_v15 = vadd.f32 %v909_v7, %v2872_v2 }
 0x1a5   : > { %v725_v11 = vadd.f32 %v724_v8, %v2815_v46  ;;  %v921_v12 = vadd.f32 %v2232_v9, %v2872_v2  ;;  %v726_v44 = vpop.f32.mrb[43].mxu0  ;;  %v912_v13 = vpop.f32.mrb[43].mxu1 }
 0x1a6   : > { %v727_v16 = vadd.f32 %v726_v44, %v2818_v49  ;;  %v913_v17 = vadd.f32 %v912_v13, %v2872_v2 }
 0x1a7   : > { %v1933_v18 = vpack.c.bf16 %v725_v11, %v721_v10  ;;  %v2108_v19 = vpack.c.bf16 %v921_v12, %v918_v5 }
 0x1a8   : > { %v2013_v20 = vpack.c.bf16 %v727_v16, %v723_v14  ;;  %v2103_v21 = vpack.c.bf16 %v913_v17, %v910_v15 }
 0x1a9   : > { %2129 = vst [vmem:[%s2829_s15 + $0x50] sm:$0xff] %v1933_v18   ;;  %2162 = vst [vmem:[%s2888_s7 + $0x68] sm:$0xff] %v2108_v19  }
 0x1aa   : > { %2144 = vst [vmem:[%s2834_s6 + $0x50] sm:$0xff] %v2013_v20   ;;  %2161 = vst [vmem:[%s2888_s7 + $0x60] sm:$0xff] %v2103_v21   ;;  %v730_v22 = vpop.f32.mrb[44].mxu0  ;;  %v2235_v23 = vpop.f32.mrb[44].mxu1 }
 0x1ab   : > { %v934_v24 = vadd.f32 %v2235_v23, %v2872_v2  ;;  %v732_v25 = vpop.f32.mrb[45].mxu0  ;;  %v925_v26 = vpop.f32.mrb[45].mxu1  ;;  %v731_v29 = vadd.f32 %v730_v22, %v2815_v46 }
 0x1ac   : > { %v734_v27 = vpop.f32.mrb[46].mxu0  ;;  %v2236_v28 = vpop.f32.mrb[46].mxu1  ;;  %v733_v34 = vadd.f32 %v732_v25, %v2818_v49  ;;  %v926_v35 = vadd.f32 %v925_v26, %v2872_v2 }
 0x1ad   : > { %v735_v30 = vadd.f32 %v734_v27, %v2815_v46  ;;  %v937_v31 = vadd.f32 %v2236_v28, %v2872_v2  ;;  %v736_v32 = vpop.f32.mrb[47].mxu0  ;;  %v928_v33 = vpop.f32.mrb[47].mxu1 }
 0x1ae   : > { %v737_v36 = vadd.f32 %v736_v32, %v2818_v49  ;;  %v929_v37 = vadd.f32 %v928_v33, %v2872_v2 }
 0x1af   : > { %v1938_v46 = vpack.c.bf16 %v735_v30, %v731_v29  ;;  %v2118_v38 = vpack.c.bf16 %v937_v31, %v934_v24 }
 0x1b0   : > { %v2018_v39 = vpack.c.bf16 %v737_v36, %v733_v34  ;;  %v2113_v40 = vpack.c.bf16 %v929_v37, %v926_v35 }
 0x1b1   : > { %2130 = vst [vmem:[%s2829_s15 + $0x58] sm:$0xff] %v1938_v46   ;;  %2164 = vst [vmem:[%s2888_s7 + $0x78] sm:$0xff] %v2118_v38   ;;  %s2439_s15 = scalar_lea.vmem %s2438_s24, 4096 }
 0x1b2   : > { %2145 = vst [vmem:[%s2834_s6 + $0x58] sm:$0xff] %v2018_v39   ;;  %2163 = vst [vmem:[%s2888_s7 + $0x70] sm:$0xff] %v2113_v40   ;;  %p2441_p13 = scmp.lt.s32.totalorder %s2439_s15, %s2433_s0 }
 0x1b4   : > { %p2442_p3 = por %p2441_p13, %p2440_p10 }
 0x1b6   : > { %p2443_p7 = pnand %p2442_p3, %p2436_p8 }
 0x1b8   : > { %2446 = shalt.err (!%p2443_p7)
}
 0x1b9   : > { %s2447_s6 = scalar_lea.hbm %s2981_s29, 2048  ;;  %s2451_s8 = scalar_lea.hbm %s3107_s3, 4096 }
 0x1ba   : > { %p2448_p9 = scmp.ne.s32.totalorder %s2981_s29, %s2447_s6  ;;  %p2452_p5 = scmp.lt.u32.totalorder %s2981_s29, %s3107_s3 }
 0x1bb   : > { %p2453_p11 = scmp.lt.u32.totalorder %s2451_s8, %s2447_s6  ;;  %p2455_p4 = scmp.lt.u32.totalorder %s2447_s6, %s2981_s29 }
 0x1bc   : > { %p2449_p2 = pnand %p2448_p9, %p2700_p12 }
 0x1bd   : > { %p2454_p1 = por %p2453_p11, %p2452_p5 }
 0x1be   : > { %p2450_p0 = pneg %p2449_p2 }
 0x1bf   : > { %p2456_p6 = por %p2455_p4, %p2454_p1 }
 0x1c1   : > { %p2457_p8 = pnand %p2456_p6, %p2450_p0 }
 0x1c3   : > { %2460 = shalt.err (!%p2457_p8)
}
 0x1c4   : > { %s2573_s0 = smov 64   ;;  %s2574_s24 = smov 4  }
 0x1c5   : > { %2259 = dma.vmem_to_hbm [thread:$0]  (%p2700_p12), %s2983_s28, 2048, %s2981_s29, %s1421_s16, %s2573_s0, %s2573_s0, %s2574_s24  }
 0x1c6   : > { %s3127_s15 = sand.u32 1, %s2628_s22   ;;  %s2461_s7 = scalar_lea.vmem %s2990_s27, 2048 }
 0x1c7   : > { %s3032_s6 = scalar_lea.sflag [#allocation9], %s3127_s15  ;;  %p2462_p10 = scmp.ne.s32.totalorder %s2990_s27, %s2461_s7 }
 0x1c8   : > { %s2575_s14 = smov [#allocation8]  }
 0x1c9   : > { %p2463_p13 = pnand %p2462_p10, %p2700_p12  ;;  %s2465_s8 = sshll.u32 %s2575_s14, 4  ;;  %s2466_s8 = int_to_ptr.vmem [resolvable:$false] %s2465_s8 }
 0x1ca   : > { %s2467_s13 = scalar_lea.vmem %s2466_s8, 4096  ;;  %p2468_p7 = scmp.lt.s32.totalorder %s2990_s27, %s2466_s8 }
 0x1cb   : > { %p2464_p3 = pneg %p2463_p13  ;;  %p2469_p9 = scmp.lt.s32.totalorder %s2467_s13, %s2461_s7 }
 0x1cd   : > { %p2470_p2 = por %p2469_p9, %p2468_p7 }
 0x1cf   : > { %p2471_p0 = pnand %p2470_p2, %p2464_p3 }
 0x1d1   : > { %2474 = shalt.err (!%p2471_p0)
}
 0x1d2   : > { %s2475_s22 = scalar_lea.hbm %s2988_s26, 2048  ;;  %s2479_s28 = scalar_lea.hbm %s3108_s4, 4096 }
 0x1d3   : > { %p2476_p5 = scmp.ne.s32.totalorder %s2988_s26, %s2475_s22  ;;  %p2480_p4 = scmp.lt.u32.totalorder %s2988_s26, %s3108_s4 }
 0x1d4   : > { %p2481_p6 = scmp.lt.u32.totalorder %s2479_s28, %s2475_s22  ;;  %p2483_p10 = scmp.lt.u32.totalorder %s2475_s22, %s2988_s26 }
 0x1d5   : > { %p2477_p11 = pnand %p2476_p5, %p2700_p12 }
 0x1d6   : > { %p2482_p8 = por %p2481_p6, %p2480_p4 }
 0x1d7   : > { %p2478_p1 = pneg %p2477_p11 }
 0x1d8   : > { %p2484_p13 = por %p2483_p10, %p2482_p8 }
 0x1da   : > { %p2485_p3 = pnand %p2484_p13, %p2478_p1 }
 0x1dc   : > { %2488 = shalt.err (!%p2485_p3)
}
 0x1dd   : > { %2260 = dma.vmem_to_hbm [thread:$0]  (%p2700_p12), %s2990_s27, 2048, %s2988_s26, %s3032_s6, %s2573_s0, %s2573_s0, %s2574_s24  }
 0x1de   : > { %s2489_s15 = scalar_lea.vmem %s2999_s17, 2048  ;;  %s2576_s7 = smov [#allocation10]  }
 0x1df   : > { %p2490_p7 = scmp.ne.s32.totalorder %s2999_s17, %s2489_s15  ;;  %s2493_s14 = sshll.u32 %s2576_s7, 4  ;;  %s2494_s14 = int_to_ptr.vmem [resolvable:$false] %s2493_s14 }
 0x1e0   : > { %s2495_s8 = scalar_lea.vmem %s2494_s14, 4096  ;;  %p2496_p0 = scmp.lt.s32.totalorder %s2999_s17, %s2494_s14 }
 0x1e1   : > { %p2491_p9 = pnand %p2490_p7, %p2700_p12  ;;  %p2497_p5 = scmp.lt.s32.totalorder %s2495_s8, %s2489_s15 }
 0x1e3   : > { %p2492_p2 = pneg %p2491_p9  ;;  %p2498_p11 = por %p2497_p5, %p2496_p0 }
 0x1e5   : > { %p2499_p1 = pnand %p2498_p11, %p2492_p2 }
 0x1e7   : > { %2502 = shalt.err (!%p2499_p1)
}
 0x1e8   : > { %s2503_s27 = scalar_lea.hbm %s2997_s23, 2048  ;;  %s2507_s22 = scalar_lea.hbm %s3109_s5, 4096 }
 0x1e9   : > { %p2504_p4 = scmp.ne.s32.totalorder %s2997_s23, %s2503_s27  ;;  %p2508_p10 = scmp.lt.u32.totalorder %s2997_s23, %s3109_s5 }
 0x1ea   : > { %p2509_p13 = scmp.lt.u32.totalorder %s2507_s22, %s2503_s27  ;;  %p2511_p7 = scmp.lt.u32.totalorder %s2503_s27, %s2997_s23 }
 0x1eb   : > { %p2505_p6 = pnand %p2504_p4, %p2700_p12 }
 0x1ec   : > { %p2510_p3 = por %p2509_p13, %p2508_p10 }
 0x1ed   : > { %p2506_p8 = pneg %p2505_p6 }
 0x1ee   : > { %p2512_p9 = por %p2511_p7, %p2510_p3 }
 0x1f0   : > { %p2513_p2 = pnand %p2512_p9, %p2506_p8 }
 0x1f2   : > { %2516 = shalt.err (!%p2513_p2)
}
 0x1f3   : > { %2261 = dma.vmem_to_hbm [thread:$0]  (%p2700_p12), %s2999_s17, 2048, %s2997_s23, %s3032_s6, %s2573_s0, %s2573_s0, %s2574_s24  }
 0x1f4 PF: > { %s1491_s28 = sand.u32 1, %s2551_s18   ;;  %p3128_p0 = scmp.ne.s32.totalorder %s3116_s25, 0 }
 0x1f5   : > { %p3129_p5 = scmp.ge.s32.totalorder %s2563_s21, 2  ;;  %s1492_s29 = scalar_lea.sflag [#allocation4], %s1491_s28 }
 0x1f7   : > { %p2274_p11 = pnand %p3129_p5, %p3128_p0 }
 0x1f9   : > { %2542 = dma.done.wait (!%p2274_p11), %s1492_s29, 2048  }
 0x1fa   : > { %2544 = vsyncadd (!%p2274_p11), %s1492_s29, 4294965248  ;;  %s3130_s10 = sadd.s32 4294967294, %s2563_s21  }
 0x1fb   : > { %s1500_s11 = sand.u32 1, %s3130_s10  }
 0x1fc   : > { %s1501_s15 = scalar_lea.sflag [#allocation9], %s1500_s11 }
 0x1fd   : > { %2546 = dma.done.wait (!%p2274_p11), %s1501_s15, 4096  }
 0x1fe   : > { %2548 = vsyncadd (!%p2274_p11), %s1501_s15, 4294963200  ;;  %p23_p12 = scmp.ge.s32.totalorder %s2665_s30, 4   ;;  %s3131_s18 = smov %s2555_s19 }
 0x1ff   : > { %s3132_s19 = smov %s2559_s20  ;;  %s3133_s20 = smov %s2696_s9 }
 0x200   : > { %s3134_s21 = smov %s2665_s30  ;;  %25 = sbr.rel (!%p23_p12) target bundleno = 10 (0xa), region = 113 }
 0x207   :  { %1515 = vsyncpa [#allocation3], 1 }
 0x208   :  { %1517 = vsyncpa [#allocation3 + $0x1], 1 }
 0x209   :  { %1518 = vsyncpa [#allocation6], 1 }
 0x20a   :  { %1519 = vsyncpa [#allocation4], 1 }
 0x20b   :  { %1521 = vsyncpa [#allocation4 + $0x1], 1 }
 0x20c   :  { %1522 = vsyncpa [#allocation9], 1 }
 0x20d   :  { %1524 = vsyncpa [#allocation9 + $0x1], 1 }

</bundles_post_ra>
